<compile_context>
chip_gen: v7x
topology: tpu7x:2x2x1
jax: 0.10.0
libtpu: 0.0.40
codegen_flags: <defaults>
</compile_context>

<pallas_src>
import functools
import math

import jax
import jax.numpy as jnp
from jax.experimental import pallas as pl
from jax.experimental.pallas import tpu as pltpu


def _cdiv(a, b):
    return (a + b - 1) // b


def _round_up(x, m):
    return ((x + m - 1) // m) * m


def _kernel_act(name):
    if name == "relu":
        return lambda v: jnp.maximum(v, 0.0)
    if name == "tanh":
        return jnp.tanh
    if name == "sigmoid":
        # EUP-friendly: exp + approximate reciprocal instead of a VPU divide.
        return lambda v: pl.reciprocal(1.0 + jnp.exp(-v), approx=True)
    raise ValueError(
        "you can only input activate function 'relu', 'sigmoid', 'tanh' ")


def _make_mlp_kernel(num_layers, activate_function):
    act = _kernel_act(activate_function)

    def kernel(x_ref, *refs):
        # refs = (w0, b0, w1, b1, ..., w_{L-1}, b_{L-1}, out_ref)
        out_ref = refs[-1]
        p = refs[:-1]

        x = x_ref[...]                         # (1, TB)  batch on lanes

        # ---- input layer: in_features == 1 -> VPU broadcast multiply -------
        w0 = p[0][...]                         # (h0, 1)
        b0 = p[1][...]                         # (h0, 1)
        h = act(w0 * x + b0)                   # (h0, TB)

        # ---- interior hidden layers: W @ h (PyTorch layout, no transpose) --
        for li in range(1, num_layers - 1):
            w = p[2 * li][...]                 # (out_f, in_f)
            b = p[2 * li + 1][...]             # (out_f, 1)
            h = act(jnp.dot(w, h, preferred_element_type=jnp.float32) + b)

        # ---- output layer: out_features == 1 -> lane-dense sublane reduce --
        wl = p[2 * (num_layers - 1)][...]      # (h_last, 1)
        bl = p[2 * (num_layers - 1) + 1][...]  # (1, 1)
        out_ref[...] = jnp.sum(h * wl, axis=0, keepdims=True) + bl   # (1, TB)

    return kernel


def _vmem_capacity_bytes():
    """Generation-aware VMEM capacity; conservative fallback = v7x per-TC."""
    try:
        info = pltpu.get_tpu_info()
        cap = getattr(info, "vmem_capacity_bytes", None)
        if cap:
            return int(cap)
    except Exception:
        pass
    return 64 * 1024 * 1024


def _choose_tile(batch, max_hidden):
    """Pick the batch tile TB and an explicit vmem_limit_bytes."""
    capacity = _vmem_capacity_bytes()
    # Explicit scoped-VMEM limit: well under physical on every generation.
    vmem_limit = int(min(int(capacity * 0.85), 100 * 1024 * 1024))

    # Per-row f32 footprint estimate: double-buffered x + out blocks plus a
    # few live (max_hidden, TB) activation temporaries per layer.
    bytes_per_row = 4 * (2 + 2 + 3 * max(max_hidden, 1))
    tb_cap = (int(vmem_limit * 0.45) // bytes_per_row // 128) * 128
    tb_cap = int(min(max(tb_cap, 128), 65536))      # 64K-row absolute cap

    if batch <= 256:
        # Single full-array block (no 128-alignment requirement when the
        # block equals the array dims).
        tb = batch
    else:
        # At least 2 tiles so the "parallel" axis shards across v7x's 2 TCs.
        tb = min(tb_cap, _round_up(_cdiv(batch, 2), 128))
        tb = max(tb, 128)
    return tb, vmem_limit


@functools.partial(
    jax.jit, static_argnames=("tb", "vmem_limit", "activate_function"))
def _run(x2, flat_params, tb, vmem_limit, activate_function):
    batch = x2.shape[1]
    num_tiles = _cdiv(batch, tb)            # ragged last tile handled by Pallas
    num_layers = len(flat_params) // 2
    kernel = _make_mlp_kernel(num_layers, activate_function)

    # Weights/biases: full-array blocks, constant index_map -> VMEM-resident.
    param_specs = [pl.BlockSpec(p.shape, lambda i: (0, 0)) for p in flat_params]

    return pl.pallas_call(
        kernel,
        out_shape=jax.ShapeDtypeStruct((1, batch), jnp.float32),
        grid=(num_tiles,),
        in_specs=[pl.BlockSpec((1, tb), lambda i: (0, i))] + param_specs,
        out_specs=pl.BlockSpec((1, tb), lambda i: (0, i)),
        compiler_params=pltpu.CompilerParams(
            dimension_semantics=("parallel",),
            vmem_limit_bytes=vmem_limit),
    )(x2, *flat_params)


def my_fnn_forward(x, params, activate_function="relu"):
    """x: (batch, 1); params: list of (W, b) in PyTorch nn.Linear layout."""
    if activate_function not in ("relu", "sigmoid", "tanh"):
        raise ValueError(
            "you can only input activate function 'relu', 'sigmoid', 'tanh' ")
    batch = x.shape[0]
    num_layers = len(params)
    assert num_layers >= 2, "module always has input_layer + output_layer"
    max_hidden = max(w.shape[0] for (w, _) in params[:-1])

    # No pad / no extra copy: (batch,1) -> (1,batch) is a bit-layout-preserving
    # reshape; the ragged tail (batch % TB != 0) is handled by partial blocks.
    x2 = jnp.asarray(x, jnp.float32).reshape(1, batch)

    flat = []
    for li, (w, b) in enumerate(params):
        w = jnp.asarray(w, jnp.float32)
        b = jnp.asarray(b, jnp.float32)
        if li == num_layers - 1:
            w = w.T                    # (1, h_last) -> (h_last, 1)
            b = b.reshape(1, 1)
        else:
            b = b.reshape(-1, 1)       # (out_f,) -> (out_f, 1)
        flat.append(w)
        flat.append(b)

    tb, vmem_limit = _choose_tile(batch, max_hidden)
    out2 = _run(x2, tuple(flat), tb, vmem_limit, activate_function)
    return out2.reshape(batch, 1)


def init_params(key, hidden_sizes):
    """PyTorch-style init: U(-1/sqrt(fan_in), 1/sqrt(fan_in)); W:(out,in), b:(out,)."""
    sizes = [1] + list(hidden_sizes) + [1]
    params = []
    for i in range(len(sizes) - 1):
        fan_in, fan_out = sizes[i], sizes[i + 1]
        key, kw, kb = jax.random.split(key, 3)
        bound = 1.0 / math.sqrt(fan_in)
        w = jax.random.uniform(kw, (fan_out, fan_in), jnp.float32, -bound, bound)
        b = jax.random.uniform(kb, (fan_out,), jnp.float32, -bound, bound)
        params.append((w, b))
    return params


def _reference(x, params, activate_function):
    act = {"relu": lambda v: jnp.maximum(v, 0.0),
           "sigmoid": jax.nn.sigmoid,
           "tanh": jnp.tanh}[activate_function]
    h = x.astype(jnp.float32)
    n = len(params)
    for li, (w, b) in enumerate(params):
        h = h @ w.T + b
        if li < n - 1:
            h = act(h)
    return h


if __name__ == "__main__":
    key = jax.random.PRNGKey(0)

    # Config 1: module defaults (hidden_sizes=[10], relu), tiny batch.
    key, kx1, kp1 = jax.random.split(key, 3)
    batch1 = 8
    x1 = jax.random.normal(kx1, (batch1, 1), jnp.float32)
    params1 = init_params(kp1, [10])
    out1 = jax.block_until_ready(my_fnn_forward(x1, params1, "relu"))
    ref1 = _reference(x1, params1, "relu")
    assert out1.shape == (batch1, 1), out1.shape
    assert jnp.allclose(out1, ref1, atol=1e-5, rtol=1e-5), (out1, ref1)

    # Config 2: two hidden layers (interior MXU path), tanh, batch not a
    # multiple of 128 (single full-array block).
    key, kx2, kp2 = jax.random.split(key, 3)
    batch2 = 37
    x2 = jax.random.normal(kx2, (batch2, 1), jnp.float32)
    params2 = init_params(kp2, [16, 8])
    out2 = jax.block_until_ready(my_fnn_forward(x2, params2, "tanh"))
    ref2 = _reference(x2, params2, "tanh")
    assert out2.shape == (batch2, 1), out2.shape
    assert jnp.allclose(out2, ref2, atol=1e-4, rtol=1e-4), (out2, ref2)

    # Config 3: multi-tile grid with a ragged last tile + approx-reciprocal
    # sigmoid path.
    key, kx3, kp3 = jax.random.split(key, 3)
    batch3 = 777
    x3 = jax.random.normal(kx3, (batch3, 1), jnp.float32)
    params3 = init_params(kp3, [12])
    out3 = jax.block_until_ready(my_fnn_forward(x3, params3, "sigmoid"))
    ref3 = _reference(x3, params3, "sigmoid")
    assert out3.shape == (batch3, 1), out3.shape
    assert jnp.allclose(out3, ref3, atol=5e-3, rtol=5e-3), (out3, ref3)

    print("KERNEL_OK")
</pallas_src>

<mosaic_0001>
module attributes {stable_mosaic.version = 11 : i64} {
  func.func @kernel(%arg0: i32, %arg1: memref<1x8xf32, #tpu.memory_space<vmem>>, %arg2: memref<10x1xf32, #tpu.memory_space<vmem>>, %arg3: memref<10x1xf32, #tpu.memory_space<vmem>>, %arg4: memref<10x1xf32, #tpu.memory_space<vmem>>, %arg5: memref<1x1xf32, #tpu.memory_space<vmem>>, %arg6: memref<1x8xf32, #tpu.memory_space<vmem>>) attributes {dimension_semantics = [#tpu.dimension_semantics<parallel>], iteration_bounds = array<i64: 1>, scalar_prefetch = 0 : i64, scratch_operands = 0 : i64, tpu.core_type = #tpu.core_type<tc>, window_params = [{transform_indices = @transform_0, window_bounds = array<i64: 1, 8>}, {pipeline_mode = #tpu.pipeline_mode<synchronous>, transform_indices = @transform_1, window_bounds = array<i64: 10, 1>}, {pipeline_mode = #tpu.pipeline_mode<synchronous>, transform_indices = @transform_2, window_bounds = array<i64: 10, 1>}, {pipeline_mode = #tpu.pipeline_mode<synchronous>, transform_indices = @transform_3, window_bounds = array<i64: 10, 1>}, {pipeline_mode = #tpu.pipeline_mode<synchronous>, transform_indices = @transform_4, window_bounds = array<i64: 1, 1>}, {transform_indices = @transform_5, window_bounds = array<i64: 1, 8>}]} {
    %c0 = arith.constant 0 : index
    %c0_0 = arith.constant 0 : index
    %0 = vector.load %arg1[%c0, %c0_0] : memref<1x8xf32, #tpu.memory_space<vmem>>, vector<1x8xf32>
    %c0_1 = arith.constant 0 : index
    %c0_2 = arith.constant 0 : index
    %1 = vector.load %arg2[%c0_1, %c0_2] : memref<10x1xf32, #tpu.memory_space<vmem>>, vector<10x1xf32>
    %c0_3 = arith.constant 0 : index
    %c0_4 = arith.constant 0 : index
    %2 = vector.load %arg3[%c0_3, %c0_4] : memref<10x1xf32, #tpu.memory_space<vmem>>, vector<10x1xf32>
    %3 = vector.broadcast %1 : vector<10x1xf32> to vector<10x8xf32>
    %4 = vector.broadcast %0 : vector<1x8xf32> to vector<10x8xf32>
    %5 = arith.mulf %3, %4 : vector<10x8xf32>
    %6 = vector.broadcast %2 : vector<10x1xf32> to vector<10x8xf32>
    %7 = arith.addf %5, %6 : vector<10x8xf32>
    %cst = arith.constant 0.000000e+00 : f32
    %8 = vector.broadcast %cst : f32 to vector<10x8xf32>
    %9 = arith.maximumf %7, %8 : vector<10x8xf32>
    %c0_5 = arith.constant 0 : index
    %c0_6 = arith.constant 0 : index
    %10 = vector.load %arg4[%c0_5, %c0_6] : memref<10x1xf32, #tpu.memory_space<vmem>>, vector<10x1xf32>
    %c0_7 = arith.constant 0 : index
    %c0_8 = arith.constant 0 : index
    %11 = vector.load %arg5[%c0_7, %c0_8] : memref<1x1xf32, #tpu.memory_space<vmem>>, vector<1x1xf32>
    %12 = vector.broadcast %10 : vector<10x1xf32> to vector<10x8xf32>
    %13 = arith.mulf %9, %12 : vector<10x8xf32>
    %cst_9 = arith.constant dense<0.000000e+00> : vector<8xf32>
    %14 = vector.multi_reduction <add>, %13, %cst_9 [0] : vector<10x8xf32> to vector<8xf32>
    %15 = vector.shape_cast %14 : vector<8xf32> to vector<1x8xf32>
    %16 = vector.broadcast %11 : vector<1x1xf32> to vector<1x8xf32>
    %17 = arith.addf %15, %16 : vector<1x8xf32>
    %c0_10 = arith.constant 0 : index
    %c0_11 = arith.constant 0 : index
    %18 = vector.load %arg6[%c0_10, %c0_11] : memref<1x8xf32, #tpu.memory_space<vmem>>, vector<1x8xf32>
    tpu.vector_store %arg6[%c0_10, %c0_11], %17 {strides = array<i32>} : memref<1x8xf32, #tpu.memory_space<vmem>>, vector<1x8xf32>,
    return
  }
  func.func @transform_0(%arg0: i32) -> (i32, i32) {
    %c0_i32 = arith.constant 0 : i32
    %c0_i32_0 = arith.constant 0 : i32
    return %c0_i32, %arg0 : i32, i32
  }
  func.func @transform_1(%arg0: i32) -> (i32, i32) {
    %c0_i32 = arith.constant 0 : i32
    %c0_i32_0 = arith.constant 0 : i32
    %c0_i32_1 = arith.constant 0 : i32
    return %c0_i32, %c0_i32_0 : i32, i32
  }
  func.func @transform_2(%arg0: i32) -> (i32, i32) {
    %c0_i32 = arith.constant 0 : i32
    %c0_i32_0 = arith.constant 0 : i32
    %c0_i32_1 = arith.constant 0 : i32
    return %c0_i32, %c0_i32_0 : i32, i32
  }
  func.func @transform_3(%arg0: i32) -> (i32, i32) {
    %c0_i32 = arith.constant 0 : i32
    %c0_i32_0 = arith.constant 0 : i32
    %c0_i32_1 = arith.constant 0 : i32
    return %c0_i32, %c0_i32_0 : i32, i32
  }
  func.func @transform_4(%arg0: i32) -> (i32, i32) {
    %c0_i32 = arith.constant 0 : i32
    %c0_i32_0 = arith.constant 0 : i32
    %c0_i32_1 = arith.constant 0 : i32
    return %c0_i32, %c0_i32_0 : i32, i32
  }
  func.func @transform_5(%arg0: i32) -> (i32, i32) {
    %c0_i32 = arith.constant 0 : i32
    %c0_i32_0 = arith.constant 0 : i32
    return %c0_i32, %arg0 : i32, i32
  }
}

</mosaic_0001>

<bundles_post_ra>
// kernel: _run.1
= control target key start
LH: loop header
LB: loop body
LE: loop exit
PB: predicated region body
PF: predicated region fallthrough
CT: control target
= control target key end

     0   :  { %s209_s0 = inlined_call_operand.vmem [shape: f32[1,8], index: 0, kind: input, shape index: {}]   ;;  %s210_s1 = inlined_call_operand.vmem [shape: f32[10,1], index: 1, kind: input, shape index: {}]   ;;  %s211_s2 = inlined_call_operand.vmem [shape: f32[10,1], index: 2, kind: input, shape index: {}]   ;;  %s212_s3 = inlined_call_operand.vmem [shape: f32[10,1], index: 3, kind: input, shape index: {}]   ;;  %s213_s4 = inlined_call_operand.<no memory space> [shape: f32[1,1], index: 4, kind: input, shape index: {}]   ;;  %s214_s5 = inlined_call_operand.hbm [shape: f32[1,8], index: 5, kind: output, shape index: {}]  }
   0x1   :  { %v10_v0 = vstv %s213_s4 }
   0x2   :  { %11 = vst [vmem:[#allocation2] sm:$0x1] %v10_v0 }
   0x3   :  { %v26_v1 = vld [vmem:[%s211_s2] sm:$0xff]  ;;  %v141_v3 = vmov 0  }
   0x4   :  { %v24_v2 = vld [vmem:[%s210_s1] sm:$0xff]  ;;  %116 = vset.pattern.permute.xlu1 %v141_v3  ;;  %115 = vset.pattern.permute.xlu0 %v141_v3 }
   0x5   :  { %48 = vperm.xlu1 %116, %v26_v1   ;;  %30 = vperm.xlu0 %115, %v24_v2  }
   0x6   :  { %12 = vsyncpa [#allocation4], 0  ;;  %v27_v4 = vld [vmem:[%s211_s2 + $0x8] sm:$0x3]  ;;  %v60_v7 = vld [vmem:[%s212_s3] sm:$0xff]  ;;  %vm77_vm0 = vcmask 58368   ;;  %v91_v27 = vlaneseq }
   0x7   :  { %v25_v5 = vld [vmem:[%s210_s1 + $0x8] sm:$0x3]  ;;  %v112_v9 = vld [vmem:[%s209_s0] ss:$0 sm:$0xff]  ;;  %vm75_vm1 = vcmask 64512   ;;  %s142_s0 = smov [#allocation3]  }
   0x8   :  { %v61_v6 = vld [vmem:[%s212_s3 + $0x8] sm:$0x3]  ;;  %v92_v30 = vshrl.u32 %v91_v27, 7  ;;  %s104_s1 = sshll.u32 %s142_s0, 4  ;;  %vm96_vm2 = vcmask 57344   ;;  %s105_s1 = int_to_ptr.vmem [resolvable:$true] %s104_s1 }
   0x9   :  { %53 = vperm.xlu1 %116, %v27_v4   ;;  %35 = vperm.xlu0 %115, %v25_v5   ;;  %v62_v8 = vld [vmem:[#allocation2] sm:$0x1]  ;;  %s117_s3 = scalar_lea.vmem %s105_s1, 16  ;;  %s121_s7 = scalar_lea.vmem %s105_s1, 32 }
   0xa   :  { %v93_v32 = vsub.s32 0, %v92_v30  ;;  %p118_p0 = scmp.ne.s32.totalorder %s105_s1, %s117_s3  ;;  %p122_p1 = scmp.lt.s32.totalorder %s105_s1, %s105_s1 }
   0xb   :  { %p123_p2 = scmp.lt.s32.totalorder %s121_s7, %s117_s3 }
   0xd   :  { %70 = vperm.xlu1 %116, %v61_v6   ;;  %65 = vperm.xlu0 %115, %v60_v7   ;;  %p124_p3 = por %p123_p2, %p122_p1 }
   0xf   :  { %p125_p4 = pnand %p124_p3, %p118_p0 }
  0x11   :  { %88 = vperm.xlu0 %115, %v62_v8  }
  0x84   :  { %v49_v10 = vpop.permute.xlu1 %48  ;;  %v31_v11 = vpop.permute.xlu0 %30 }
  0x85   :  { %v44_v12 = vmul.f32 %v112_v9, %v31_v11 }
  0x87   :  { %v56_v13 = vadd.f32 %v49_v10, %v44_v12 }
  0x88   :  { %v54_v14 = vpop.permute.xlu1 %53  ;;  %v36_v15 = vpop.permute.xlu0 %35 }
  0x89   :  { %v45_v16 = vmul.f32 %v112_v9, %v36_v15  ;;  %v58_v18 = vmax.f32 %v56_v13, 0.0 }
  0x8b   :  { %v57_v17 = vadd.f32 %v54_v14, %v45_v16 }
  0x8c   :  { %v66_v19 = vpop.permute.xlu0 %65  ;;  %v71_v22 = vpop.permute.xlu1 %70 }
  0x8d   :  { %v59_v20 = vmax.f32 %v57_v17, 0.0  ;;  %v73_v21 = vmul.f32 %v66_v19, %v58_v18 }
  0x8f   :  { %v74_v23 = vmul.f32 %v71_v22, %v59_v20  ;;  %v76_v25 = vsel %vm75_vm1, %v73_v21, 0.0 }
  0x90   :  { %v89_v34 = vpop.permute.xlu0 %88 }
  0x91   :  { %v78_v24 = vsel %vm77_vm0, %v74_v23, 0.0  ;;  %v94_v37 = vrot.slane %v89_v34, %v93_v32 }
  0x92   :  { %v79_v26 = vadd.f32 %v78_v24, %v76_v25 }
  0x94   :  { %v80_v28 = vrot.slane %v79_v26, 4 }
  0x96   :  { %v81_v29 = vadd.f32 %v80_v28, %v79_v26 }
  0x98   :  { %v82_v31 = vrot.slane %v81_v29, 2 }
  0x9a   :  { %v83_v33 = vadd.f32 %v82_v31, %v81_v29 }
  0x9c   :  { %v84_v35 = vrot.slane %v83_v33, 1 }
  0x9e   :  { %v85_v36 = vadd.f32 %v84_v35, %v83_v33 }
  0xa0   :  { %v95_v38 = vadd.f32 %v94_v37, %v85_v36 }
  0xa2   :  { %97 = vst.msk [vmem:[#allocation3] sm:$0x1] %vm96_vm2, %v95_v38 }
  0xa3   :  { %128 = shalt.err (!%p125_p4)
}
  0xa4   :  { %s129_s10 = scalar_lea.hbm %s214_s5, 16 }
  0xa5   :  { %p130_p5 = scmp.ne.s32.totalorder %s214_s5, %s129_s10  ;;  %p133_p6 = scmp.lt.u32.totalorder %s129_s10, %s214_s5 }
  0xa7   :  { %p135_p7 = pnand %p133_p6, %p130_p5 }
  0xa9   :  { %138 = shalt.err (!%p135_p7)
}
  0xaa   :  { %107 = dma.vmem_to_hbm [thread:$0]  %s105_s1, 16, %s214_s5, [#allocation4]  }
  0xab   :  { %139 = dma.done.wait [#allocation4], 16  }
  0xac   :  { %140 = vsyncadd [#allocation4], 4294967280 }
  0xad   :  { %111 = vsyncpa [#allocation4], 1 }

</bundles_post_ra>
